<compile_context>
chip_gen: v6e
topology: v6e:2x2x1
jax: 0.10.0
libtpu: 0.0.40
codegen_flags: <defaults>
</compile_context>

<pallas_src>
import functools

import jax
import jax.numpy as jnp
from jax.experimental import pallas as pl
from jax.experimental.pallas import tpu as pltpu


def _make_kernel(N, H, W, eps):
    def kernel(x_ref, w_ref, g_ref, b_ref, o_ref, xp_ref):
        # x_ref : (N, H, W, Ct)     unpadded NHWC input block (channel tile Ct)
        # w_ref : (9, Ct)           depthwise taps, row t = 3*dh + dw
        # g_ref : (1, Ct)           batchnorm gamma
        # b_ref : (1, Ct)           batchnorm beta
        # o_ref : (N, H, W, Ct)     output block
        # xp_ref: (N, H+2, W+2, Ct) f32 VMEM scratch holding the halo
        ct = o_ref.shape[-1]

        # In-kernel zero padding (halo). Re-done every grid step so it is
        # correct regardless of how the "parallel" axis is sharded over cores.
        xp_ref[...] = jnp.zeros_like(xp_ref)
        xp_ref[:, 1:H + 1, 1:W + 1, :] = x_ref[...].astype(jnp.float32)

        # 9-tap depthwise conv as shifted elementwise multiply-accumulate.
        acc = jnp.zeros((N, H, W, ct), jnp.float32)
        for dh in range(3):
            for dw in range(3):
                t = 3 * dh + dw
                tap = xp_ref[:, dh:dh + H, dw:dw + W, :]          # (N,H,W,Ct)
                wgt = w_ref[t:t + 1, :]                           # (1,Ct)
                acc = acc + tap * wgt

        # BatchNorm2d (training mode): per-channel mean / biased variance over
        # (N, H, W) -- entirely contained in this channel block.  Two-pass
        # (diff based) variance for numerical robustness.
        inv_cnt = 1.0 / float(N * H * W)
        mean = jnp.sum(acc, axis=(0, 1, 2), keepdims=True) * inv_cnt
        diff = acc - mean
        var = jnp.sum(diff * diff, axis=(0, 1, 2), keepdims=True) * inv_cnt
        inv_std = jax.lax.rsqrt(var + eps)                        # EUP rsqrt
        scale = inv_std * g_ref[0:1, :]                           # (1,1,1,Ct)
        o_ref[...] = (diff * scale + b_ref[0:1, :]).astype(o_ref.dtype)

    return kernel


def _pick_c_tile(C, N, H, W, itemsize):
    """Largest channel tile that divides C and keeps per-block IO modest.

    Bigger tiles => fewer grid steps => less fixed per-step overhead, which
    dominates at 7x7 spatial sizes.  The VMEM footprint is checked against a
    small per-block budget so double-buffering always fits comfortably.
    """
    budget = 3 << 20                                   # per IO block (bytes)
    io_item = max(itemsize, 4)
    for cand in (1920, 1536, 1280, 1152, 1024, 960, 896, 768, 640,
                 512, 384, 256, 128):
        if C % cand == 0 and N * H * 8 * cand * io_item <= budget:
            return cand
    return 128


@functools.partial(jax.jit, static_argnames=("eps", "c_tile"))
def dwconv_bn(x_nchw, w_oihw, gamma, beta, eps=1e-3, c_tile=None):
    """x_nchw: (N, C, H, W); w_oihw: (C, 1, 3, 3) depthwise; gamma/beta: (C,)."""
    N, C, H, W = x_nchw.shape
    itemsize = jnp.dtype(x_nchw.dtype).itemsize
    if c_tile is None:
        c_tile = _pick_c_tile(C, N, H, W, itemsize)
    Cp = ((C + c_tile - 1) // c_tile) * c_tile

    # Layout plumbing. The NCHW API forces one transpose each way; the halo is
    # handled in-kernel so there is no additional HBM round trip for padding.
    x_nhwc = jnp.transpose(x_nchw, (0, 2, 3, 1))                   # (N,H,W,C)
    w9c = jnp.transpose(w_oihw[:, 0, :, :], (1, 2, 0)).reshape(9, C)
    w9c = w9c.astype(jnp.float32)
    g = gamma.reshape(1, C).astype(jnp.float32)
    b = beta.reshape(1, C).astype(jnp.float32)

    if Cp != C:
        pad_c = Cp - C
        x_nhwc = jnp.pad(x_nhwc, ((0, 0), (0, 0), (0, 0), (0, pad_c)))
        w9c = jnp.pad(w9c, ((0, 0), (0, pad_c)))
        g = jnp.pad(g, ((0, 0), (0, pad_c)))
        b = jnp.pad(b, ((0, 0), (0, pad_c)))

    kernel = _make_kernel(N, H, W, float(eps))

    # Conservative per-step VMEM budget:
    #   double-buffered IO blocks + params + halo scratch + f32 temporaries.
    w_sub = ((W + 7) // 8) * 8
    wp_sub = ((W + 2 + 7) // 8) * 8
    io_blk = N * H * w_sub * c_tile * itemsize
    params = (16 + 8 + 8) * c_tile * 4
    scratch_bytes = N * (H + 2) * wp_sub * c_tile * 4
    temps = 3 * N * H * w_sub * c_tile * 4
    vmem_limit = 4 * io_blk + 2 * params + scratch_bytes + temps + (4 << 20)
    vmem_limit = int(min(max(vmem_limit, 8 << 20), 32 << 20))

    out_nhwc = pl.pallas_call(
        kernel,
        out_shape=jax.ShapeDtypeStruct((N, H, W, Cp), x_nchw.dtype),
        grid_spec=pltpu.PrefetchScalarGridSpec(
            num_scalar_prefetch=0,
            grid=(Cp // c_tile,),
            in_specs=[
                pl.BlockSpec((N, H, W, c_tile), lambda c: (0, 0, 0, c)),
                pl.BlockSpec((9, c_tile), lambda c: (0, c)),
                pl.BlockSpec((1, c_tile), lambda c: (0, c)),
                pl.BlockSpec((1, c_tile), lambda c: (0, c)),
            ],
            out_specs=pl.BlockSpec((N, H, W, c_tile), lambda c: (0, 0, 0, c)),
            scratch_shapes=[pltpu.VMEM((N, H + 2, W + 2, c_tile), jnp.float32)],
        ),
        compiler_params=pltpu.CompilerParams(
            dimension_semantics=("parallel",),
            vmem_limit_bytes=vmem_limit,
        ),
    )(x_nhwc, w9c, g, b)

    out_nhwc = out_nhwc[..., :C]
    return jnp.transpose(out_nhwc, (0, 3, 1, 2))   # back to NCHW


def _reference(x_nchw, w_oihw, gamma, beta, eps=1e-3):
    C = x_nchw.shape[1]
    y = jax.lax.conv_general_dilated(
        x_nchw, w_oihw, window_strides=(1, 1), padding=((1, 1), (1, 1)),
        dimension_numbers=("NCHW", "OIHW", "NCHW"), feature_group_count=C)
    mean = y.mean(axis=(0, 2, 3), keepdims=True)
    var = ((y - mean) ** 2).mean(axis=(0, 2, 3), keepdims=True)
    return ((y - mean) / jnp.sqrt(var + eps)) * gamma.reshape(1, -1, 1, 1) \
        + beta.reshape(1, -1, 1, 1)


if __name__ == "__main__":
    # Small shapes consistent with the module (original: N=1, C=3840, H=W=7).
    # C=384 with an explicit C_TILE=128 exercises a 3-step channel-tiled
    # (pipelined) grid; the second call exercises the default large-tile path.
    # TODO(synk): BatchNorm running_mean/running_var buffer updates
    # (momentum=0.1) are training-state side effects, not part of the output.
    N, C, H, W = 2, 384, 7, 7
    key = jax.random.PRNGKey(0)
    kx, kw, kg, kb = jax.random.split(key, 4)

    x = jax.random.normal(kx, (N, C, H, W), dtype=jnp.float32)
    # Depthwise conv weight: (C_out=C, C_in/groups=1, 3, 3), no bias.
    w = jax.random.normal(kw, (C, 1, 3, 3), dtype=jnp.float32) * 0.1
    gamma = 1.0 + 0.1 * jax.random.normal(kg, (C,), dtype=jnp.float32)
    beta = 0.1 * jax.random.normal(kb, (C,), dtype=jnp.float32)

    ref = _reference(x, w, gamma, beta, eps=1e-3)

    out = dwconv_bn(x, w, gamma, beta, eps=1e-3, c_tile=128)
    out = jax.block_until_ready(out)
    assert out.shape == (N, C, H, W)
    assert jnp.allclose(out, ref, atol=5e-4, rtol=5e-4), \
        float(jnp.max(jnp.abs(out - ref)))

    out2 = dwconv_bn(x, w, gamma, beta, eps=1e-3)   # default (large) tile path
    out2 = jax.block_until_ready(out2)
    assert jnp.allclose(out2, ref, atol=5e-4, rtol=5e-4), \
        float(jnp.max(jnp.abs(out2 - ref)))

    print("KERNEL_OK")
</pallas_src>

<mosaic_0001>
module attributes {stable_mosaic.version = 11 : i64} {
  func.func @kernel(%arg0: i32, %arg1: memref<2x7x7x128xf32, #tpu.memory_space<vmem>>, %arg2: memref<9x128xf32, #tpu.memory_space<vmem>>, %arg3: memref<1x128xf32, #tpu.memory_space<vmem>>, %arg4: memref<1x128xf32, #tpu.memory_space<vmem>>, %arg5: memref<2x7x7x128xf32, #tpu.memory_space<vmem>>, %arg6: memref<2x9x9x128xf32, #tpu.memory_space<vmem>>) attributes {dimension_semantics = [#tpu.dimension_semantics<parallel>], iteration_bounds = array<i64: 3>, scalar_prefetch = 0 : i64, scratch_operands = 1 : i64, tpu.core_type = #tpu.core_type<tc>, window_params = [{transform_indices = @transform_0, window_bounds = array<i64: 2, 7, 7, 128>}, {transform_indices = @transform_1, window_bounds = array<i64: 9, 128>}, {transform_indices = @transform_2, window_bounds = array<i64: 1, 128>}, {transform_indices = @transform_3, window_bounds = array<i64: 1, 128>}, {transform_indices = @transform_4, window_bounds = array<i64: 2, 7, 7, 128>}]} {
    %cst = arith.constant 0.000000e+00 : f32
    %0 = vector.broadcast %cst : f32 to vector<2x9x9x128xf32>
    %c0 = arith.constant 0 : index
    %c0_0 = arith.constant 0 : index
    %c0_1 = arith.constant 0 : index
    %c0_2 = arith.constant 0 : index
    %1 = vector.load %arg6[%c0, %c0_0, %c0_1, %c0_2] : memref<2x9x9x128xf32, #tpu.memory_space<vmem>>, vector<2x9x9x128xf32>
    tpu.vector_store %arg6[%c0, %c0_0, %c0_1, %c0_2], %0 {strides = array<i32>} : memref<2x9x9x128xf32, #tpu.memory_space<vmem>>, vector<2x9x9x128xf32>,
    %c0_3 = arith.constant 0 : index
    %c0_4 = arith.constant 0 : index
    %c0_5 = arith.constant 0 : index
    %c0_6 = arith.constant 0 : index
    %2 = vector.load %arg1[%c0_3, %c0_4, %c0_5, %c0_6] : memref<2x7x7x128xf32, #tpu.memory_space<vmem>>, vector<2x7x7x128xf32>
    %c0_7 = arith.constant 0 : index
    %c1 = arith.constant 1 : index
    %c1_8 = arith.constant 1 : index
    %c0_9 = arith.constant 0 : index
    %3 = vector.load %arg6[%c0_7, %c1, %c1_8, %c0_9] : memref<2x9x9x128xf32, #tpu.memory_space<vmem>>, vector<2x7x7x128xf32>
    tpu.vector_store %arg6[%c0_7, %c1, %c1_8, %c0_9], %2 {strides = array<i32>} : memref<2x9x9x128xf32, #tpu.memory_space<vmem>>, vector<2x7x7x128xf32>,
    %cst_10 = arith.constant 0.000000e+00 : f32
    %4 = vector.broadcast %cst_10 : f32 to vector<2x7x7x128xf32>
    %c0_11 = arith.constant 0 : index
    %c0_12 = arith.constant 0 : index
    %c0_13 = arith.constant 0 : index
    %c0_14 = arith.constant 0 : index
    %5 = vector.load %arg6[%c0_11, %c0_12, %c0_13, %c0_14] : memref<2x9x9x128xf32, #tpu.memory_space<vmem>>, vector<2x7x7x128xf32>
    %c0_15 = arith.constant 0 : index
    %c0_16 = arith.constant 0 : index
    %6 = vector.load %arg2[%c0_15, %c0_16] : memref<9x128xf32, #tpu.memory_space<vmem>>, vector<1x128xf32>
    %7 = vector.shape_cast %6 : vector<1x128xf32> to vector<1x1x1x128xf32>
    %8 = vector.broadcast %7 : vector<1x1x1x128xf32> to vector<2x7x7x128xf32>
    %9 = arith.mulf %5, %8 : vector<2x7x7x128xf32>
    %10 = arith.addf %4, %9 : vector<2x7x7x128xf32>
    %c0_17 = arith.constant 0 : index
    %c0_18 = arith.constant 0 : index
    %c1_19 = arith.constant 1 : index
    %c0_20 = arith.constant 0 : index
    %11 = vector.load %arg6[%c0_17, %c0_18, %c1_19, %c0_20] : memref<2x9x9x128xf32, #tpu.memory_space<vmem>>, vector<2x7x7x128xf32>
    %c1_21 = arith.constant 1 : index
    %c0_22 = arith.constant 0 : index
    %12 = vector.load %arg2[%c1_21, %c0_22] : memref<9x128xf32, #tpu.memory_space<vmem>>, vector<1x128xf32>
    %13 = vector.shape_cast %12 : vector<1x128xf32> to vector<1x1x1x128xf32>
    %14 = vector.broadcast %13 : vector<1x1x1x128xf32> to vector<2x7x7x128xf32>
    %15 = arith.mulf %11, %14 : vector<2x7x7x128xf32>
    %16 = arith.addf %10, %15 : vector<2x7x7x128xf32>
    %c0_23 = arith.constant 0 : index
    %c0_24 = arith.constant 0 : index
    %c2 = arith.constant 2 : index
    %c0_25 = arith.constant 0 : index
    %17 = vector.load %arg6[%c0_23, %c0_24, %c2, %c0_25] : memref<2x9x9x128xf32, #tpu.memory_space<vmem>>, vector<2x7x7x128xf32>
    %c2_26 = arith.constant 2 : index
    %c0_27 = arith.constant 0 : index
    %18 = vector.load %arg2[%c2_26, %c0_27] : memref<9x128xf32, #tpu.memory_space<vmem>>, vector<1x128xf32>
    %19 = vector.shape_cast %18 : vector<1x128xf32> to vector<1x1x1x128xf32>
    %20 = vector.broadcast %19 : vector<1x1x1x128xf32> to vector<2x7x7x128xf32>
    %21 = arith.mulf %17, %20 : vector<2x7x7x128xf32>
    %22 = arith.addf %16, %21 : vector<2x7x7x128xf32>
    %c0_28 = arith.constant 0 : index
    %c1_29 = arith.constant 1 : index
    %c0_30 = arith.constant 0 : index
    %c0_31 = arith.constant 0 : index
    %23 = vector.load %arg6[%c0_28, %c1_29, %c0_30, %c0_31] : memref<2x9x9x128xf32, #tpu.memory_space<vmem>>, vector<2x7x7x128xf32>
    %c3 = arith.constant 3 : index
    %c0_32 = arith.constant 0 : index
    %24 = vector.load %arg2[%c3, %c0_32] : memref<9x128xf32, #tpu.memory_space<vmem>>, vector<1x128xf32>
    %25 = vector.shape_cast %24 : vector<1x128xf32> to vector<1x1x1x128xf32>
    %26 = vector.broadcast %25 : vector<1x1x1x128xf32> to vector<2x7x7x128xf32>
    %27 = arith.mulf %23, %26 : vector<2x7x7x128xf32>
    %28 = arith.addf %22, %27 : vector<2x7x7x128xf32>
    %c0_33 = arith.constant 0 : index
    %c1_34 = arith.constant 1 : index
    %c1_35 = arith.constant 1 : index
    %c0_36 = arith.constant 0 : index
    %29 = vector.load %arg6[%c0_33, %c1_34, %c1_35, %c0_36] : memref<2x9x9x128xf32, #tpu.memory_space<vmem>>, vector<2x7x7x128xf32>
    %c4 = arith.constant 4 : index
    %c0_37 = arith.constant 0 : index
    %30 = vector.load %arg2[%c4, %c0_37] : memref<9x128xf32, #tpu.memory_space<vmem>>, vector<1x128xf32>
    %31 = vector.shape_cast %30 : vector<1x128xf32> to vector<1x1x1x128xf32>
    %32 = vector.broadcast %31 : vector<1x1x1x128xf32> to vector<2x7x7x128xf32>
    %33 = arith.mulf %29, %32 : vector<2x7x7x128xf32>
    %34 = arith.addf %28, %33 : vector<2x7x7x128xf32>
    %c0_38 = arith.constant 0 : index
    %c1_39 = arith.constant 1 : index
    %c2_40 = arith.constant 2 : index
    %c0_41 = arith.constant 0 : index
    %35 = vector.load %arg6[%c0_38, %c1_39, %c2_40, %c0_41] : memref<2x9x9x128xf32, #tpu.memory_space<vmem>>, vector<2x7x7x128xf32>
    %c5 = arith.constant 5 : index
    %c0_42 = arith.constant 0 : index
    %36 = vector.load %arg2[%c5, %c0_42] : memref<9x128xf32, #tpu.memory_space<vmem>>, vector<1x128xf32>
    %37 = vector.shape_cast %36 : vector<1x128xf32> to vector<1x1x1x128xf32>
    %38 = vector.broadcast %37 : vector<1x1x1x128xf32> to vector<2x7x7x128xf32>
    %39 = arith.mulf %35, %38 : vector<2x7x7x128xf32>
    %40 = arith.addf %34, %39 : vector<2x7x7x128xf32>
    %c0_43 = arith.constant 0 : index
    %c2_44 = arith.constant 2 : index
    %c0_45 = arith.constant 0 : index
    %c0_46 = arith.constant 0 : index
    %41 = vector.load %arg6[%c0_43, %c2_44, %c0_45, %c0_46] : memref<2x9x9x128xf32, #tpu.memory_space<vmem>>, vector<2x7x7x128xf32>
    %c6 = arith.constant 6 : index
    %c0_47 = arith.constant 0 : index
    %42 = vector.load %arg2[%c6, %c0_47] : memref<9x128xf32, #tpu.memory_space<vmem>>, vector<1x128xf32>
    %43 = vector.shape_cast %42 : vector<1x128xf32> to vector<1x1x1x128xf32>
    %44 = vector.broadcast %43 : vector<1x1x1x128xf32> to vector<2x7x7x128xf32>
    %45 = arith.mulf %41, %44 : vector<2x7x7x128xf32>
    %46 = arith.addf %40, %45 : vector<2x7x7x128xf32>
    %c0_48 = arith.constant 0 : index
    %c2_49 = arith.constant 2 : index
    %c1_50 = arith.constant 1 : index
    %c0_51 = arith.constant 0 : index
    %47 = vector.load %arg6[%c0_48, %c2_49, %c1_50, %c0_51] : memref<2x9x9x128xf32, #tpu.memory_space<vmem>>, vector<2x7x7x128xf32>
    %c7 = arith.constant 7 : index
    %c0_52 = arith.constant 0 : index
    %48 = vector.load %arg2[%c7, %c0_52] : memref<9x128xf32, #tpu.memory_space<vmem>>, vector<1x128xf32>
    %49 = vector.shape_cast %48 : vector<1x128xf32> to vector<1x1x1x128xf32>
    %50 = vector.broadcast %49 : vector<1x1x1x128xf32> to vector<2x7x7x128xf32>
    %51 = arith.mulf %47, %50 : vector<2x7x7x128xf32>
    %52 = arith.addf %46, %51 : vector<2x7x7x128xf32>
    %c0_53 = arith.constant 0 : index
    %c2_54 = arith.constant 2 : index
    %c2_55 = arith.constant 2 : index
    %c0_56 = arith.constant 0 : index
    %53 = vector.load %arg6[%c0_53, %c2_54, %c2_55, %c0_56] : memref<2x9x9x128xf32, #tpu.memory_space<vmem>>, vector<2x7x7x128xf32>
    %c8 = arith.constant 8 : index
    %c0_57 = arith.constant 0 : index
    %54 = vector.load %arg2[%c8, %c0_57] : memref<9x128xf32, #tpu.memory_space<vmem>>, vector<1x128xf32>
    %55 = vector.shape_cast %54 : vector<1x128xf32> to vector<1x1x1x128xf32>
    %56 = vector.broadcast %55 : vector<1x1x1x128xf32> to vector<2x7x7x128xf32>
    %57 = arith.mulf %53, %56 : vector<2x7x7x128xf32>
    %58 = arith.addf %52, %57 : vector<2x7x7x128xf32>
    %cst_58 = arith.constant dense<0.000000e+00> : vector<128xf32>
    %59 = vector.multi_reduction <add>, %58, %cst_58 [0, 1, 2] : vector<2x7x7x128xf32> to vector<128xf32>
    %60 = vector.shape_cast %59 : vector<128xf32> to vector<1x1x1x128xf32>
    %cst_59 = arith.constant 0.0102040814 : f32
    %61 = vector.broadcast %cst_59 : f32 to vector<1x1x1x128xf32>
    %62 = arith.mulf %60, %61 : vector<1x1x1x128xf32>
    %63 = vector.broadcast %62 : vector<1x1x1x128xf32> to vector<2x7x7x128xf32>
    %64 = arith.subf %58, %63 : vector<2x7x7x128xf32>
    %65 = arith.mulf %64, %64 : vector<2x7x7x128xf32>
    %cst_60 = arith.constant dense<0.000000e+00> : vector<128xf32>
    %66 = vector.multi_reduction <add>, %65, %cst_60 [0, 1, 2] : vector<2x7x7x128xf32> to vector<128xf32>
    %67 = vector.shape_cast %66 : vector<128xf32> to vector<1x1x1x128xf32>
    %cst_61 = arith.constant 0.0102040814 : f32
    %68 = vector.broadcast %cst_61 : f32 to vector<1x1x1x128xf32>
    %69 = arith.mulf %67, %68 : vector<1x1x1x128xf32>
    %cst_62 = arith.constant 1.000000e-03 : f32
    %70 = vector.broadcast %cst_62 : f32 to vector<1x1x1x128xf32>
    %71 = arith.addf %69, %70 : vector<1x1x1x128xf32>
    %72 = math.rsqrt %71 : vector<1x1x1x128xf32>
    %c0_63 = arith.constant 0 : index
    %c0_64 = arith.constant 0 : index
    %73 = vector.load %arg3[%c0_63, %c0_64] : memref<1x128xf32, #tpu.memory_space<vmem>>, vector<1x128xf32>
    %74 = vector.shape_cast %73 : vector<1x128xf32> to vector<1x1x1x128xf32>
    %75 = arith.mulf %72, %74 : vector<1x1x1x128xf32>
    %76 = vector.broadcast %75 : vector<1x1x1x128xf32> to vector<2x7x7x128xf32>
    %77 = arith.mulf %64, %76 : vector<2x7x7x128xf32>
    %c0_65 = arith.constant 0 : index
    %c0_66 = arith.constant 0 : index
    %78 = vector.load %arg4[%c0_65, %c0_66] : memref<1x128xf32, #tpu.memory_space<vmem>>, vector<1x128xf32>
    %79 = vector.shape_cast %78 : vector<1x128xf32> to vector<1x1x1x128xf32>
    %80 = vector.broadcast %79 : vector<1x1x1x128xf32> to vector<2x7x7x128xf32>
    %81 = arith.addf %77, %80 : vector<2x7x7x128xf32>
    %c0_67 = arith.constant 0 : index
    %c0_68 = arith.constant 0 : index
    %c0_69 = arith.constant 0 : index
    %c0_70 = arith.constant 0 : index
    %82 = vector.load %arg5[%c0_67, %c0_68, %c0_69, %c0_70] : memref<2x7x7x128xf32, #tpu.memory_space<vmem>>, vector<2x7x7x128xf32>
    tpu.vector_store %arg5[%c0_67, %c0_68, %c0_69, %c0_70], %81 {strides = array<i32>} : memref<2x7x7x128xf32, #tpu.memory_space<vmem>>, vector<2x7x7x128xf32>,
    return
  }
  func.func @transform_0(%arg0: i32) -> (i32, i32, i32, i32) {
    %c0_i32 = arith.constant 0 : i32
    %c0_i32_0 = arith.constant 0 : i32
    %c0_i32_1 = arith.constant 0 : i32
    %c0_i32_2 = arith.constant 0 : i32
    return %c0_i32, %c0_i32_0, %c0_i32_1, %arg0 : i32, i32, i32, i32
  }
  func.func @transform_1(%arg0: i32) -> (i32, i32) {
    %c0_i32 = arith.constant 0 : i32
    %c0_i32_0 = arith.constant 0 : i32
    return %c0_i32, %arg0 : i32, i32
  }
  func.func @transform_2(%arg0: i32) -> (i32, i32) {
    %c0_i32 = arith.constant 0 : i32
    %c0_i32_0 = arith.constant 0 : i32
    return %c0_i32, %arg0 : i32, i32
  }
  func.func @transform_3(%arg0: i32) -> (i32, i32) {
    %c0_i32 = arith.constant 0 : i32
    %c0_i32_0 = arith.constant 0 : i32
    return %c0_i32, %arg0 : i32, i32
  }
  func.func @transform_4(%arg0: i32) -> (i32, i32, i32, i32) {
    %c0_i32 = arith.constant 0 : i32
    %c0_i32_0 = arith.constant 0 : i32
    %c0_i32_1 = arith.constant 0 : i32
    %c0_i32_2 = arith.constant 0 : i32
    return %c0_i32, %c0_i32_0, %c0_i32_1, %arg0 : i32, i32, i32, i32
  }
}

</mosaic_0001>

<bundles_post_ra>
// kernel: dwconv_bn.1
= control target key start
LH: loop header
LB: loop body
LE: loop exit
PB: predicated region body
PF: predicated region fallthrough
CT: control target
= control target key end

     0   :  { %s1296_s15 = smov 0   ;;  %s1298_s16 = smov 0   ;;  %s1793_s0 = inlined_call_operand.vmem [shape: f32[2,7,7,384], index: 0, kind: input, shape index: {}]   ;;  %s1794_s1 = inlined_call_operand.vmem [shape: f32[9,384], index: 1, kind: input, shape index: {}]   ;;  %s1795_s2 = inlined_call_operand.vmem [shape: f32[1,384], index: 2, kind: input, shape index: {}]   ;;  %s1796_s3 = inlined_call_operand.vmem [shape: f32[1,384], index: 3, kind: input, shape index: {}]   ;;  %s1797_s4 = inlined_call_operand.vmem [shape: f32[2,7,7,384], index: 4, kind: output, shape index: {}]  }
   0x1   :  { %s1300_s17 = smov 0  }
   0x2 LB: > { %s1312_s18 = sadd.s32 4294967295, %s1268_s17   ;;  %s1315_s19 = sadd.s32 1, %s1268_s17   ;;  %s1268_s17 = sphi %s1300_s17, %s1802_s17   ;;  %s1264_s16 = sphi %s1298_s16, %s1801_s16   ;;  %s1260_s15 = sphi %s1296_s15, %s1800_s15  }
   0x3   : > { %s18_s20 = ssub.s32 %s1268_s17, %s1315_s19  ;;  %s21_s21 = sadd.s32 1, %s1264_s16 }
   0x4   : > { %p19_p0 = scmp.eq.s32.totalorder %s18_s20, 0  ;;  %p28_p1 = scmp.ne.s32.totalorder %s1264_s16, %s1260_s15 }
   0x5   : > { %p29_p2 = scmp.eq.s32.totalorder %s1268_s17, 0  ;;  %p136_p3 = scmp.eq.s32.totalorder %s1312_s18, 2 }
   0x6   : > { %s1325_s22 = scalar_select %p19_p0, %s1264_s16, %s21_s21  }
   0x7   : > { %p1327_p4 = por %p29_p2, %p28_p1  ;;  %p1331_p5 = por %p136_p3, %p28_p1 }
   0x8   : > { %p1198_p6 = scmp.ge.s32.totalorder %s1268_s17, 3 }
   0xa   : > { %158 = sbr.rel (%p1198_p6) target bundleno = 32 (0x20), region = 16 }
   0xf   : > { %161 = sbr.rel (!%p1327_p4) target bundleno = 27 (0x1b), region = 20  ;;  %s163_s25 = sand.u32 (%p1327_p4), 1, %s1264_s16  }
  0x10   : > { %s1199_s26 = sshll.u32 (%p1327_p4), %s1268_s17, 3  ;;  %s1217_s27 = smul.u32 (%p1327_p4), 112, %s163_s25 }
  0x11   : > { %s167_s30 = scalar_lea.vmem (%p1327_p4), %s1793_s0, %s1199_s26 }
  0x12   : > { %v222_v0 = vld [vmem:[%s167_s30] sm:$0xff] (%p1327_p4)  ;;  %v224_v1 = vld [vmem:[%s167_s30 + $0x18] sm:$0xff] (%p1327_p4)  ;;  %v226_v2 = vld [vmem:[%s167_s30 + $0x30] sm:$0xff] (%p1327_p4)  ;;  %s165_s5 = scalar_lea.vmem (%p1327_p4), [#allocation3], %s1217_s27 }
  0x13   : > { %v228_v3 = vld [vmem:[%s167_s30 + $0x48] sm:$0xff] (%p1327_p4)  ;;  %v230_v4 = vld [vmem:[%s167_s30 + $0x60] sm:$0xff] (%p1327_p4)  ;;  %v232_v5 = vld [vmem:[%s167_s30 + $0x78] sm:$0xff] (%p1327_p4)  ;;  %223 = vst [vmem:[%s165_s5] sm:$0xff] (%p1327_p4), %v222_v0 }
  0x14   : > { %225 = vst [vmem:[%s165_s5 + $0x8] sm:$0xff] %v224_v1  ;;  %227 = vst [vmem:[%s165_s5 + $0x10] sm:$0xff] %v226_v2  ;;  %v234_v6 = vld [vmem:[%s167_s30 + $0x90] sm:$0xff]  ;;  %v236_v7 = vld [vmem:[%s167_s30 + $0xa8] sm:$0xff] }
  0x15   : > { %229 = vst [vmem:[%s165_s5 + $0x18] sm:$0xff] %v228_v3  ;;  %231 = vst [vmem:[%s165_s5 + $0x20] sm:$0xff] %v230_v4  ;;  %v238_v8 = vld [vmem:[%s167_s30 + $0xc0] sm:$0xff]  ;;  %v240_v9 = vld [vmem:[%s167_s30 + $0xd8] sm:$0xff] }
  0x16   : > { %233 = vst [vmem:[%s165_s5 + $0x28] sm:$0xff] %v232_v5  ;;  %235 = vst [vmem:[%s165_s5 + $0x30] sm:$0xff] %v234_v6  ;;  %v242_v10 = vld [vmem:[%s167_s30 + $0xf0] sm:$0xff]  ;;  %v244_v11 = vld [vmem:[%s167_s30 + $0x108] sm:$0xff] }
  0x17   : > { %237 = vst [vmem:[%s165_s5 + $0x38] sm:$0xff] %v236_v7  ;;  %239 = vst [vmem:[%s165_s5 + $0x40] sm:$0xff] %v238_v8  ;;  %v246_v12 = vld [vmem:[%s167_s30 + $0x120] sm:$0xff]  ;;  %v248_v13 = vld [vmem:[%s167_s30 + $0x138] sm:$0xff] }
  0x18   : > { %241 = vst [vmem:[%s165_s5 + $0x48] sm:$0xff] %v240_v9  ;;  %243 = vst [vmem:[%s165_s5 + $0x50] sm:$0xff] %v242_v10 }
  0x19   : > { %245 = vst [vmem:[%s165_s5 + $0x58] sm:$0xff] %v244_v11  ;;  %247 = vst [vmem:[%s165_s5 + $0x60] sm:$0xff] %v246_v12 }
  0x1a   : > { %249 = vst [vmem:[%s165_s5 + $0x68] sm:$0xff] %v248_v13 }
  0x1b PF: > { %255 = sbr.rel (!%p1327_p4) target bundleno = 32 (0x20), region = 58  ;;  %s257_s6 = sand.u32 (%p1327_p4), 1, %s1264_s16  }
  0x1c   : > { %s1201_s7 = sshll.u32 (%p1327_p4), %s1268_s17, 3  ;;  %s1200_s8 = sshll.u32 (%p1327_p4), %s257_s6, 4 }
  0x1d   : > { %s261_s11 = scalar_lea.vmem (%p1327_p4), %s1794_s1, %s1201_s7  ;;  %s259_s12 = scalar_lea.vmem (%p1327_p4), [#allocation4], %s1200_s8 }
  0x1e   : > { %v292_v14 = vld [vmem:[%s261_s11] sm:$0xff] (%p1327_p4)  ;;  %v294_v15 = vld [vmem:[%s261_s11 + $0x18] sm:$0xff] (%p1327_p4) }
  0x1f   : > { %293 = vst [vmem:[%s259_s12] sm:$0xff] (%p1327_p4), %v292_v14  ;;  %295 = vst [vmem:[%s259_s12 + $0x8] sm:$0xff] (%p1327_p4), %v294_v15 }
  0x20 PF: > { %p1202_p7 = scmp.ge.s32.totalorder %s1268_s17, 1  ;;  %p312_p8 = scmp.lt.s32.totalorder %s1268_s17, 4 }
  0x22   : > { %p313_p9 = pnand %p1202_p7, %p312_p8 }
  0x23   : > { %s319_s13 = sand.u32 (!%p313_p9), 1, %s1260_s15   ;;  %p360_p10 = scmp.lt.s32.totalorder (!%p313_p9), %s1312_s18, 2 }
  0x24   : > { %316 = sbr.rel (%p313_p9) target bundleno = 247 (0xf7), region = 104  ;;  %s1203_s20 = sshll.u32 (!%p313_p9), %s319_s13, 4 }
  0x25   : > { %s1355_s14 = smul.u32 (!%p313_p9), 112, %s319_s13  ;;  %s1360_s15 = scalar_lea.vmem (!%p313_p9), [#allocation4], %s1203_s20 }
  0x27   : > { %s321_s17 = scalar_lea.vmem (!%p313_p9), [#allocation3], %s1355_s14  ;;  %s1741_s30 = scalar_lea.vmem (!%p313_p9), [#allocation5], %s1355_s14 }
  0x29   : > { %v1270_v16 = vmov 0.0   ;;  %v402_v17 = vld [vmem:[%s321_s17] sm:$0x7f]  ;;  %v403_v18 = vld [vmem:[%s321_s17 + $0x8] sm:$0x7f]  ;;  %vm855_vm0 = vcmask 1046528  }
  0x2a   : > { %366 = vst [vmem:[#allocation2] sm:$0xff] %v1270_v16  ;;  %367 = vst [vmem:[#allocation2 + $0x8] sm:$0x1] %v1270_v16  ;;  %v404_v19 = vld [vmem:[%s321_s17 + $0x10] sm:$0x7f]  ;;  %s361_s21 = scalar_select %p360_p10, %s1312_s18, 2 }
  0x2b   : > { %368 = vst [vmem:[#allocation2 + $0x10] sm:$0xff] %v1270_v16  ;;  %369 = vst [vmem:[#allocation2 + $0x18] sm:$0x1] %v1270_v16  ;;  %v405_v20 = vld [vmem:[%s321_s17 + $0x18] sm:$0x7f]  ;;  %s1214_s5 = sshll.u32 (%p1331_p5), %s1312_s18, 3 }
  0x2c   : > { %370 = vst [vmem:[#allocation2 + $0x20] sm:$0xff] %v1270_v16  ;;  %371 = vst [vmem:[#allocation2 + $0x28] sm:$0x1] %v1270_v16  ;;  %v406_v21 = vld [vmem:[%s321_s17 + $0x20] sm:$0x7f]  ;;  %s362_s26 = scalar_lea.vmem %s1795_s2, %s361_s21  ;;  %s365_s29 = scalar_lea.vmem %s1796_s3, %s361_s21 }
  0x2d   : > { %372 = vst [vmem:[#allocation2 + $0x30] sm:$0xff] %v1270_v16  ;;  %373 = vst [vmem:[#allocation2 + $0x38] sm:$0x1] %v1270_v16  ;;  %v407_v22 = vld [vmem:[%s321_s17 + $0x28] sm:$0x7f]  ;;  %s1017_s8 = scalar_lea.vmem (%p1331_p5), %s1797_s4, %s1214_s5 }
  0x2e   : > { %374 = vst [vmem:[#allocation2 + $0x40] sm:$0xff] %v1270_v16  ;;  %375 = vst [vmem:[#allocation2 + $0x48] sm:$0x1] %v1270_v16  ;;  %v409_v23 = vld [vmem:[%s321_s17 + $0x38] sm:$0x7f] }
  0x2f   : > { %376 = vst [vmem:[#allocation2 + $0x50] sm:$0xff] %v1270_v16  ;;  %377 = vst [vmem:[#allocation2 + $0x58] sm:$0x1] %v1270_v16  ;;  %v410_v24 = vld [vmem:[%s321_s17 + $0x40] sm:$0x7f] }
  0x30   : > { %378 = vst [vmem:[#allocation2 + $0x60] sm:$0xff] %v1270_v16  ;;  %379 = vst [vmem:[#allocation2 + $0x68] sm:$0x1] %v1270_v16  ;;  %v411_v25 = vld [vmem:[%s321_s17 + $0x48] sm:$0x7f] }
  0x31   : > { %380 = vst [vmem:[#allocation2 + $0x70] sm:$0xff] %v1270_v16  ;;  %381 = vst [vmem:[#allocation2 + $0x78] sm:$0x1] %v1270_v16  ;;  %v408_v26 = vld [vmem:[%s321_s17 + $0x30] sm:$0x7f] }
  0x32   : > { %382 = vst [vmem:[#allocation2 + $0x80] sm:$0xff] %v1270_v16  ;;  %383 = vst [vmem:[#allocation2 + $0x88] sm:$0x1] %v1270_v16  ;;  %v412_v27 = vld [vmem:[%s321_s17 + $0x50] sm:$0x7f] }
  0x33   : > { %384 = vst [vmem:[#allocation2 + $0x90] sm:$0xff] %v1270_v16  ;;  %385 = vst [vmem:[#allocation2 + $0x98] sm:$0x1] %v1270_v16  ;;  %v413_v28 = vld [vmem:[%s321_s17 + $0x58] sm:$0x7f] }
  0x34   : > { %386 = vst [vmem:[#allocation2 + $0xa0] sm:$0xff] %v1270_v16  ;;  %387 = vst [vmem:[#allocation2 + $0xa8] sm:$0x1] %v1270_v16  ;;  %v414_v29 = vld [vmem:[%s321_s17 + $0x60] sm:$0x7f] }
  0x35   : > { %388 = vst [vmem:[#allocation2 + $0xb0] sm:$0xff] %v1270_v16  ;;  %389 = vst [vmem:[#allocation2 + $0xb8] sm:$0x1] %v1270_v16  ;;  %v415_v30 = vld [vmem:[%s321_s17 + $0x68] sm:$0x7f] }
  0x36   : > { %390 = vst [vmem:[#allocation2 + $0xc0] sm:$0xff] %v1270_v16  ;;  %391 = vst [vmem:[#allocation2 + $0xc8] sm:$0x1] %v1270_v16  ;;  %v1363_v33 = vld [vmem:[%s1360_s15] ss:$0 sm:$0xff] }
  0x37   : > { %392 = vst [vmem:[#allocation2 + $0xd0] sm:$0xff] %v1270_v16  ;;  %393 = vst [vmem:[#allocation2 + $0xd8] sm:$0x1] %v1270_v16  ;;  %v1366_v34 = vld [vmem:[%s1360_s15 + $0x1] ss:$0 sm:$0xff] }
  0x38   : > { %394 = vst [vmem:[#allocation2 + $0xe0] sm:$0xff] %v1270_v16  ;;  %395 = vst [vmem:[#allocation2 + $0xe8] sm:$0x1] %v1270_v16  ;;  %v1371_v38 = vld [vmem:[%s1360_s15 + $0x2] ss:$0 sm:$0xff] }
  0x39   : > { %396 = vst [vmem:[#allocation2 + $0xf0] sm:$0xff] %v1270_v16  ;;  %397 = vst [vmem:[#allocation2 + $0xf8] sm:$0x1] %v1270_v16  ;;  %v431_v42 = vld [vmem:[#allocation2] sm:$0x7f] }
  0x3a   : > { %398 = vst [vmem:[#allocation2 + $0x100] sm:$0xff] %v1270_v16  ;;  %399 = vst [vmem:[#allocation2 + $0x108] sm:$0x1] %v1270_v16  ;;  %v438_v31 = vld [vmem:[#allocation2 + $0x90] sm:$0x7f]  ;;  %v450_v63 = vmul.f32 %v1363_v33, %v431_v42 }
  0x3b   : > { %400 = vst [vmem:[#allocation2 + $0x110] sm:$0xff] %v1270_v16  ;;  %401 = vst [vmem:[#allocation2 + $0x118] sm:$0x1] %v1270_v16  ;;  %v485_v32 = vld [vmem:[#allocation2 + $0x91] sm:$0x7f]  ;;  %v457_v35 = vmul.f32 %v1363_v33, %v438_v31 }
  0x3c   : > { %417 = vst [vmem:[#allocation2 + $0x11] sm:$0x7f] %v402_v17  ;;  %418 = vst [vmem:[#allocation2 + $0x21] sm:$0x7f] %v403_v18  ;;  %v504_v36 = vmul.f32 %v1366_v34, %v485_v32  ;;  %v532_v37 = vld [vmem:[#allocation2 + $0x92] sm:$0x7f] }
  0x3d   : > { %419 = vst [vmem:[#allocation2 + $0x31] sm:$0x7f] %v404_v19  ;;  %420 = vst [vmem:[#allocation2 + $0x41] sm:$0x7f] %v405_v20  ;;  %v551_v40 = vmul.f32 %v1371_v38, %v532_v37  ;;  %v1375_v43 = vld [vmem:[%s1360_s15 + $0x6] ss:$0 sm:$0xff] }
  0x3e   : > { %421 = vst [vmem:[#allocation2 + $0x51] sm:$0x7f] %v406_v21  ;;  %422 = vst [vmem:[#allocation2 + $0x61] sm:$0x7f] %v407_v22  ;;  %v518_v41 = vadd.f32 %v504_v36, %v457_v35  ;;  %v478_v49 = vld [vmem:[#allocation2 + $0x1] sm:$0x7f] }
  0x3f   : > { %424 = vst [vmem:[#allocation2 + $0xa1] sm:$0x7f] %v409_v23  ;;  %425 = vst [vmem:[#allocation2 + $0xb1] sm:$0x7f] %v410_v24  ;;  %v497_v6 = vmul.f32 %v1366_v34, %v478_v49  ;;  %v1412_v42 = vld [vmem:[%s1360_s15 + $0x3] ss:$0 sm:$0xff] }
  0x40   : > { %426 = vst [vmem:[#allocation2 + $0xc1] sm:$0x7f] %v411_v25  ;;  %423 = vst [vmem:[#allocation2 + $0x71] sm:$0x7f] %v408_v26  ;;  %v1380_v54 = vadd.f32 %v551_v40, %v518_v41 }
  0x41   : > { %427 = vst [vmem:[#allocation2 + $0xd1] sm:$0x7f] %v412_v27  ;;  %428 = vst [vmem:[#allocation2 + $0xe1] sm:$0x7f] %v413_v28  ;;  %v1406_v31 = vadd.f32 %v497_v6, %v450_v63 }
  0x42   : > { %429 = vst [vmem:[#allocation2 + $0xf1] sm:$0x7f] %v414_v29  ;;  %430 = vst [vmem:[#allocation2 + $0x101] sm:$0x7f] %v415_v30  ;;  %v727_v39 = vld [vmem:[#allocation2 + $0x110] sm:$0x7f] }
  0x43   : > { %v433_v44 = vld [vmem:[#allocation2 + $0x20] sm:$0x7f]  ;;  %v432_v46 = vld [vmem:[#allocation2 + $0x10] sm:$0x7f]  ;;  %v1378_v53 = vmul.f32 %v1375_v43, %v727_v39 }
  0x44   : > { %v480_v45 = vld [vmem:[#allocation2 + $0x21] sm:$0x7f]  ;;  %v434_v50 = vld [vmem:[#allocation2 + $0x30] sm:$0x7f]  ;;  %v1386_v0 = vmul.f32 %v1363_v33, %v432_v46  ;;  %v452_v5 = vmul.f32 %v1363_v33, %v433_v44 }
  0x45   : > { %v481_v51 = vld [vmem:[#allocation2 + $0x31] sm:$0x7f]  ;;  %v435_v55 = vld [vmem:[#allocation2 + $0x40] sm:$0x7f]  ;;  %v453_v1 = vmul.f32 %v1363_v33, %v434_v50  ;;  %v499_v7 = vmul.f32 %v1366_v34, %v480_v45 }
  0x46   : > { %v439_v47 = vld [vmem:[#allocation2 + $0xa0] sm:$0x7f]  ;;  %v528_v52 = vld [vmem:[#allocation2 + $0x32] sm:$0x7f]  ;;  %v500_v8 = vmul.f32 %v1366_v34, %v481_v51  ;;  %v454_v15 = vmul.f32 %v1363_v33, %v435_v55 }
  0x47   : > { %v486_v48 = vld [vmem:[#allocation2 + $0xa1] sm:$0x7f]  ;;  %v440_v56 = vld [vmem:[#allocation2 + $0xb0] sm:$0x7f]  ;;  %v458_v59 = vmul.f32 %v1363_v33, %v439_v47  ;;  %v547_v14 = vmul.f32 %v1371_v38, %v528_v52  ;;  %v1409_v40 = vadd.f32 %v499_v7, %v452_v5 }
  0x48   : > { %v487_v57 = vld [vmem:[#allocation2 + $0xb1] sm:$0x7f]  ;;  %v482_v58 = vld [vmem:[#allocation2 + $0x41] sm:$0x7f]  ;;  %v505_v60 = vmul.f32 %v1366_v34, %v486_v48  ;;  %v459_v12 = vmul.f32 %v1363_v33, %v440_v56  ;;  %v514_v41 = vadd.f32 %v500_v8, %v453_v1 }
  0x49   : > { %v441_v61 = vld [vmem:[#allocation2 + $0xc0] sm:$0x7f]  ;;  %v436_v2 = vld [vmem:[#allocation2 + $0x50] sm:$0x7f]  ;;  %v506_v13 = vmul.f32 %v1366_v34, %v487_v57  ;;  %v501_v16 = vmul.f32 %v1366_v34, %v482_v58 }
  0x4a   : > { %v488_v62 = vld [vmem:[#allocation2 + $0xc1] sm:$0x7f]  ;;  %v483_v3 = vld [vmem:[#allocation2 + $0x51] sm:$0x7f]  ;;  %v460_v18 = vmul.f32 %v1363_v33, %v441_v61  ;;  %v455_v20 = vmul.f32 %v1363_v33, %v436_v2  ;;  %v519_v23 = vadd.f32 %v505_v60, %v458_v59  ;;  %v1433_v8 = vadd.f32 %v547_v14, %v514_v41 }
  0x4b   : > { %v533_v4 = vld [vmem:[#allocation2 + $0xa2] sm:$0x7f]  ;;  %v534_v17 = vld [vmem:[#allocation2 + $0xb2] sm:$0x7f]  ;;  %v507_v19 = vmul.f32 %v1366_v34, %v488_v62  ;;  %v502_v21 = vmul.f32 %v1366_v34, %v483_v3  ;;  %v520_v35 = vadd.f32 %v506_v13, %v459_v12  ;;  %v515_v49 = vadd.f32 %v501_v16, %v454_v15 }
  0x4c   : > { %v529_v9 = vld [vmem:[#allocation2 + $0x42] sm:$0x7f]  ;;  %v530_v22 = vld [vmem:[#allocation2 + $0x52] sm:$0x7f]  ;;  %v552_v24 = vmul.f32 %v1371_v38, %v533_v4  ;;  %v553_v36 = vmul.f32 %v1371_v38, %v534_v17 }
  0x4d   : > { %v437_v10 = vld [vmem:[#allocation2 + $0x60] sm:$0x7f]  ;;  %v548_v26 = vmul.f32 %v1371_v38, %v529_v9  ;;  %v580_v30 = vld [vmem:[#allocation2 + $0xb0] sm:$0x7f]  ;;  %v1415_v44 = vmul.f32 %v1371_v38, %v530_v22  ;;  %v521_v46 = vadd.f32 %v507_v19, %v460_v18  ;;  %v516_v50 = vadd.f32 %v502_v21, %v455_v20 }
  0x4e   : > { %v484_v11 = vld [vmem:[#allocation2 + $0x61] sm:$0x7f]  ;;  %v456_v27 = vmul.f32 %v1363_v33, %v437_v10  ;;  %v442_v37 = vld [vmem:[#allocation2 + $0xd0] sm:$0x7f]  ;;  %v566_v56 = vadd.f32 %v552_v24, %v519_v23  ;;  %v599_v57 = vmul.f32 %v1412_v42, %v580_v30  ;;  %v567_v5 = vadd.f32 %v553_v36, %v520_v35 }
  0x4f   : > { %v535_v25 = vld [vmem:[#allocation2 + $0xc2] sm:$0x7f]  ;;  %v503_v28 = vmul.f32 %v1366_v34, %v484_v11  ;;  %v489_v39 = vld [vmem:[#allocation2 + $0xd1] sm:$0x7f]  ;;  %v461_v63 = vmul.f32 %v1363_v33, %v442_v37  ;;  %v1446_v22 = vadd.f32 %v548_v26, %v515_v49 }
  0x50   : > { %v579_v29 = vld [vmem:[#allocation2 + $0xa0] sm:$0x7f]  ;;  %v554_v48 = vmul.f32 %v1371_v38, %v535_v25  ;;  %v582_v58 = vld [vmem:[#allocation2 + $0xd0] sm:$0x7f]  ;;  %v508_v1 = vmul.f32 %v1366_v34, %v489_v39  ;;  %v613_v18 = vadd.f32 %v599_v57, %v566_v56  ;;  %v1449_v23 = vld [vmem:[%s1360_s15 + $0x7] ss:$0 sm:$0xff] }
  0x51   : > { %v531_v32 = vld [vmem:[#allocation2 + $0x62] sm:$0x7f]  ;;  %v598_v51 = vmul.f32 %v1412_v42, %v579_v29  ;;  %v517_v60 = vadd.f32 %v503_v28, %v456_v27  ;;  %v627_v62 = vld [vmem:[#allocation2 + $0xb1] sm:$0x7f]  ;;  %v601_v16 = vmul.f32 %v1412_v42, %v582_v58 }
  0x52   : > { %v577_v45 = vld [vmem:[#allocation2 + $0x60] sm:$0x7f]  ;;  %v550_v61 = vmul.f32 %v1371_v38, %v531_v32  ;;  %v674_v4 = vld [vmem:[#allocation2 + $0xb2] sm:$0x7f]  ;;  %v568_v15 = vadd.f32 %v554_v48, %v521_v46  ;;  %v522_v27 = vadd.f32 %v508_v1, %v461_v63 }
  0x53   : > { %v581_v47 = vld [vmem:[#allocation2 + $0xc0] sm:$0x7f]  ;;  %v1430_v3 = vmul.f32 %v1412_v42, %v577_v45  ;;  %v536_v7 = vld [vmem:[#allocation2 + $0xd2] sm:$0x7f]  ;;  %v1443_v17 = vadd.f32 %v598_v51, %v1380_v54 }
  0x54   : > { %v626_v52 = vld [vmem:[#allocation2 + $0xa1] sm:$0x7f]  ;;  %v600_v6 = vmul.f32 %v1412_v42, %v581_v47  ;;  %v578_v14 = vld [vmem:[#allocation2 + $0x70] sm:$0x7f]  ;;  %v1451_v24 = vadd.f32 %v550_v61, %v517_v60  ;;  %v555_v54 = vmul.f32 %v1371_v38, %v536_v7  ;;  %v615_v46 = vadd.f32 %v601_v16, %v568_v15 }
  0x55   : > { %v673_v55 = vld [vmem:[#allocation2 + $0xa2] sm:$0x7f]  ;;  %v625_v20 = vld [vmem:[#allocation2 + $0x71] sm:$0x7f]  ;;  %v1463_v41 = vmul.f32 %v1412_v42, %v578_v14  ;;  %v1478_v60 = vadd.f32 %v1415_v44, %v516_v50 }
  0x56   : > { %v1421_v59 = vld [vmem:[%s1360_s15 + $0x4] ss:$0 sm:$0xff]  ;;  %v1427_v2 = vld [vmem:[%s1360_s15 + $0x5] ss:$0 sm:$0xff]  ;;  %v614_v30 = vadd.f32 %v600_v6, %v567_v5  ;;  %v569_v61 = vadd.f32 %v555_v54, %v522_v27 }
  0x57   : > { %v1436_v9 = vmul.f32 %v1421_v59, %v626_v52  ;;  %v1439_v10 = vmul.f32 %v1427_v2, %v673_v55  ;;  %v628_v11 = vld [vmem:[#allocation2 + $0xc1] sm:$0x7f]  ;;  %v646_v19 = vmul.f32 %v1421_v59, %v627_v62  ;;  %v629_v21 = vld [vmem:[#allocation2 + $0xd1] sm:$0x7f]  ;;  %v1454_v25 = vmul.f32 %v1427_v2, %v674_v4 }
  0x58   : > { %v722_v12 = vld [vmem:[#allocation2 + $0xc0] sm:$0x7f]  ;;  %v723_v28 = vld [vmem:[#allocation2 + $0xd0] sm:$0x7f]  ;;  %v647_v32 = vmul.f32 %v1421_v59, %v628_v11  ;;  %v1466_v45 = vmul.f32 %v1421_v59, %v625_v20  ;;  %v648_v47 = vmul.f32 %v1421_v59, %v629_v21 }
  0x59   : > { %v675_v13 = vld [vmem:[#allocation2 + $0xc2] sm:$0x7f]  ;;  %v770_v29 = vld [vmem:[#allocation2 + $0xd1] sm:$0x7f]  ;;  %v1459_v35 = vmul.f32 %v1375_v43, %v722_v12  ;;  %v1469_v52 = vadd.f32 %v646_v19, %v613_v18  ;;  %v1472_v55 = vmul.f32 %v1375_v43, %v723_v28 }
  0x5a   : > { %v694_v26 = vmul.f32 %v1427_v2, %v675_v13  ;;  %v583_v36 = vld [vmem:[#allocation2 + $0xe0] sm:$0x7f]  ;;  %v479_v37 = vld [vmem:[#allocation2 + $0x11] sm:$0x7f]  ;;  %v1475_v56 = vmul.f32 %v1449_v23, %v770_v29  ;;  %v661_v7 = vadd.f32 %v647_v32, %v614_v30  ;;  %v662_v44 = vadd.f32 %v648_v47, %v615_v46 }
  0x5b   : > { %v525_v39 = vld [vmem:[#allocation2 + $0x2] sm:$0x7f]  ;;  %v676_v57 = vld [vmem:[#allocation2 + $0xd2] sm:$0x7f]  ;;  %v602_v62 = vmul.f32 %v1412_v42, %v583_v36  ;;  %v498_v4 = vmul.f32 %v1366_v34, %v479_v37 }
  0x5c   : > { %v443_v48 = vld [vmem:[#allocation2 + $0xe0] sm:$0x7f]  ;;  %v526_v58 = vld [vmem:[#allocation2 + $0x12] sm:$0x7f]  ;;  %v544_v5 = vmul.f32 %v1371_v38, %v525_v39  ;;  %v695_v50 = vmul.f32 %v1427_v2, %v676_v57 }
  0x5d   : > { %v490_v49 = vld [vmem:[#allocation2 + $0xe1] sm:$0x7f]  ;;  %v572_v6 = vld [vmem:[#allocation2 + $0x10] sm:$0x7f]  ;;  %v462_v11 = vmul.f32 %v1363_v33, %v443_v48  ;;  %v512_v18 = vadd.f32 %v498_v4, %v1386_v0  ;;  %v545_v19 = vmul.f32 %v1371_v38, %v526_v58  ;;  %v616_v32 = vadd.f32 %v602_v62, %v569_v61 }
  0x5e   : > { %v527_v51 = vld [vmem:[#allocation2 + $0x22] sm:$0x7f]  ;;  %v509_v12 = vmul.f32 %v1366_v34, %v490_v49  ;;  %v574_v15 = vld [vmem:[#allocation2 + $0x30] sm:$0x7f]  ;;  %v558_v29 = vadd.f32 %v544_v5, %v1406_v31  ;;  %v591_v30 = vmul.f32 %v1412_v42, %v572_v6  ;;  %v1497_v48 = vadd.f32 %v694_v26, %v661_v7 }
  0x5f   : > { %v630_v63 = vld [vmem:[#allocation2 + $0xe1] sm:$0x7f]  ;;  %v546_v13 = vmul.f32 %v1371_v38, %v527_v51  ;;  %v444_v36 = vld [vmem:[#allocation2 + $0xf0] sm:$0x7f]  ;;  %v559_v39 = vadd.f32 %v545_v19, %v512_v18  ;;  %v593_v46 = vmul.f32 %v1412_v42, %v574_v15  ;;  %v1501_v58 = vadd.f32 %v695_v50, %v662_v44 }
  0x60   : > { %v724_v1 = vld [vmem:[#allocation2 + $0xe0] sm:$0x7f]  ;;  %v649_v20 = vmul.f32 %v1421_v59, %v630_v63  ;;  %v491_v37 = vld [vmem:[#allocation2 + $0xf1] sm:$0x7f]  ;;  %v523_v49 = vadd.f32 %v509_v12, %v462_v11  ;;  %v463_v26 = vmul.f32 %v1363_v33, %v444_v36  ;;  %v605_v7 = vadd.f32 %v591_v30, %v558_v29 }
  0x61   : > { %v537_v16 = vld [vmem:[#allocation2 + $0xe2] sm:$0x7f]  ;;  %v1491_v21 = vmul.f32 %v1375_v43, %v724_v1  ;;  %v560_v0 = vadd.f32 %v546_v13, %v1409_v40  ;;  %v576_v47 = vld [vmem:[#allocation2 + $0x50] sm:$0x7f]  ;;  %v510_v5 = vmul.f32 %v1366_v34, %v491_v37 }
  0x62   : > { %v573_v14 = vld [vmem:[#allocation2 + $0x20] sm:$0x7f]  ;;  %v556_v51 = vmul.f32 %v1371_v38, %v537_v16  ;;  %v584_v57 = vld [vmem:[#allocation2 + $0xf0] sm:$0x7f]  ;;  %v663_v15 = vadd.f32 %v649_v20, %v616_v32  ;;  %v595_v16 = vmul.f32 %v1412_v42, %v576_v47 }
  0x63   : > { %v771_v27 = vld [vmem:[#allocation2 + $0xe1] sm:$0x7f]  ;;  %v592_v31 = vmul.f32 %v1412_v42, %v573_v14  ;;  %v631_v63 = vld [vmem:[#allocation2 + $0xf1] sm:$0x7f]  ;;  %v603_v44 = vmul.f32 %v1412_v42, %v584_v57  ;;  %v607_v18 = vadd.f32 %v593_v46, %v560_v0  ;;  %v524_v37 = vadd.f32 %v510_v5, %v463_v26 }
  0x64   : > { %v677_v28 = vld [vmem:[#allocation2 + $0xe2] sm:$0x7f]  ;;  %v1504_v61 = vmul.f32 %v1449_v23, %v771_v27  ;;  %v619_v1 = vld [vmem:[#allocation2 + $0x11] sm:$0x7f]  ;;  %v570_v19 = vadd.f32 %v556_v51, %v523_v49  ;;  %v1513_v14 = vmul.f32 %v1421_v59, %v631_v63  ;;  %v609_v57 = vadd.f32 %v595_v16, %v1446_v22 }
  0x65   : > { %v575_v54 = vld [vmem:[#allocation2 + $0x40] sm:$0x7f]  ;;  %v696_v62 = vmul.f32 %v1427_v2, %v677_v28  ;;  %v725_v6 = vld [vmem:[#allocation2 + $0xf0] sm:$0x7f]  ;;  %v606_v11 = vadd.f32 %v592_v31, %v559_v39  ;;  %v638_v33 = vmul.f32 %v1421_v59, %v619_v1  ;;  %v610_v63 = vadd.f32 %v1430_v3, %v1478_v60 }
  0x66   : > { %v594_v40 = vmul.f32 %v1412_v42, %v575_v54  ;;  %v620_v4 = vld [vmem:[#allocation2 + $0x21] sm:$0x7f]  ;;  %v621_v12 = vld [vmem:[#allocation2 + $0x31] sm:$0x7f]  ;;  %v1518_v29 = vmul.f32 %v1375_v43, %v725_v6  ;;  %v1533_v5 = vadd.f32 %v603_v44, %v570_v19 }
  0x67   : > { %v622_v13 = vld [vmem:[#allocation2 + $0x41] sm:$0x7f]  ;;  %v538_v50 = vld [vmem:[#allocation2 + $0xf2] sm:$0x7f]  ;;  %v639_v34 = vmul.f32 %v1421_v59, %v620_v4  ;;  %v640_v54 = vmul.f32 %v1421_v59, %v621_v12  ;;  %v652_v46 = vadd.f32 %v638_v33, %v605_v7  ;;  %v1524_v51 = vadd.f32 %v696_v62, %v663_v15 }
  0x68   : > { %v623_v27 = vld [vmem:[#allocation2 + $0x51] sm:$0x7f]  ;;  %v624_v28 = vld [vmem:[#allocation2 + $0x61] sm:$0x7f]  ;;  %v608_v20 = vadd.f32 %v594_v40, %v1433_v8  ;;  %v641_v30 = vmul.f32 %v1421_v59, %v622_v13  ;;  %v557_v0 = vmul.f32 %v1371_v38, %v538_v50  ;;  %v611_v13 = vadd.f32 %v1463_v41, %v1451_v24 }
  0x69   : > { %v666_v32 = vld [vmem:[#allocation2 + $0x12] sm:$0x7f]  ;;  %v667_v36 = vld [vmem:[#allocation2 + $0x22] sm:$0x7f]  ;;  %v653_v47 = vadd.f32 %v639_v34, %v606_v11  ;;  %v642_v31 = vmul.f32 %v1421_v59, %v623_v27  ;;  %v654_v8 = vadd.f32 %v640_v54, %v607_v18  ;;  %v643_v40 = vmul.f32 %v1421_v59, %v624_v28 }
  0x6a   : > { %v678_v39 = vld [vmem:[#allocation2 + $0xf2] sm:$0x7f]  ;;  %v669_v1 = vld [vmem:[#allocation2 + $0x42] sm:$0x7f]  ;;  %v685_v26 = vmul.f32 %v1427_v2, %v666_v32  ;;  %v686_v38 = vmul.f32 %v1427_v2, %v667_v36  ;;  %v655_v22 = vadd.f32 %v641_v30, %v608_v20  ;;  %v1539_v3 = vadd.f32 %v557_v0, %v524_v37 }
  0x6b   : > { %v668_v49 = vld [vmem:[#allocation2 + $0x32] sm:$0x7f]  ;;  %v1536_v62 = vmul.f32 %v1427_v2, %v678_v39  ;;  %v671_v6 = vld [vmem:[#allocation2 + $0x62] sm:$0x7f]  ;;  %v656_v18 = vadd.f32 %v642_v31, %v609_v57  ;;  %v688_v19 = vmul.f32 %v1427_v2, %v669_v1  ;;  %v657_v34 = vadd.f32 %v643_v40, %v610_v63 }
  0x6c   : > { %v670_v4 = vld [vmem:[#allocation2 + $0x52] sm:$0x7f]  ;;  %v687_v7 = vmul.f32 %v1427_v2, %v668_v49  ;;  %v714_v11 = vld [vmem:[#allocation2 + $0x20] sm:$0x7f]  ;;  %v699_v15 = vadd.f32 %v685_v26, %v652_v46  ;;  %v700_v50 = vadd.f32 %v686_v38, %v653_v47  ;;  %v690_v28 = vmul.f32 %v1427_v2, %v671_v6 }
  0x6d   : > { %v715_v12 = vld [vmem:[#allocation2 + $0x30] sm:$0x7f]  ;;  %v585_v60 = vld [vmem:[#allocation2 + $0x100] sm:$0x7f]  ;;  %v689_v27 = vmul.f32 %v1427_v2, %v670_v4  ;;  %v733_v30 = vmul.f32 %v1375_v43, %v714_v11  ;;  %v659_v41 = vadd.f32 %v1436_v9, %v1443_v17  ;;  %v702_v36 = vadd.f32 %v688_v19, %v655_v22  ;;  %v1557_v4 = vld [vmem:[%s1360_s15 + $0x8] ss:$0 sm:$0xff] }
  0x6e   : > { %v716_v16 = vld [vmem:[#allocation2 + $0x40] sm:$0x7f]  ;;  %v672_v44 = vld [vmem:[#allocation2 + $0x72] sm:$0x7f]  ;;  %v701_v33 = vadd.f32 %v687_v7, %v654_v8  ;;  %v734_v32 = vmul.f32 %v1375_v43, %v715_v12  ;;  %v604_v24 = vmul.f32 %v1412_v42, %v585_v60  ;;  %v658_v49 = vadd.f32 %v1466_v45, %v611_v13 }
  0x6f   : > { %v717_v20 = vld [vmem:[#allocation2 + $0x50] sm:$0x7f]  ;;  %v718_v54 = vld [vmem:[#allocation2 + $0x60] sm:$0x7f]  ;;  %v735_v39 = vmul.f32 %v1375_v43, %v716_v16  ;;  %v691_v57 = vmul.f32 %v1427_v2, %v672_v44  ;;  %v747_v31 = vadd.f32 %v733_v30, %v699_v15  ;;  %v703_v42 = vadd.f32 %v689_v27, %v656_v18 }
  0x70   : > { %v719_v37 = vld [vmem:[#allocation2 + $0x70] sm:$0x7f]  ;;  %v761_v0 = vld [vmem:[#allocation2 + $0x21] sm:$0x7f]  ;;  %v748_v8 = vadd.f32 %v734_v32, %v700_v50  ;;  %v736_v9 = vmul.f32 %v1375_v43, %v717_v20  ;;  %v737_v17 = vmul.f32 %v1375_v43, %v718_v54  ;;  %v704_v38 = vadd.f32 %v690_v28, %v657_v34 }
  0x71   : > { %v762_v46 = vld [vmem:[#allocation2 + $0x31] sm:$0x7f]  ;;  %v632_v47 = vld [vmem:[#allocation2 + $0x101] sm:$0x7f]  ;;  %v749_v1 = vadd.f32 %v735_v39, %v701_v33  ;;  %v738_v22 = vmul.f32 %v1375_v43, %v719_v37  ;;  %v780_v6 = vmul.f32 %v1449_v23, %v761_v0  ;;  %v706_v12 = vadd.f32 %v1439_v10, %v659_v41 }
  0x72   : > { %v763_v63 = vld [vmem:[#allocation2 + $0x41] sm:$0x7f]  ;;  %v721_v26 = vld [vmem:[#allocation2 + $0xb0] sm:$0x7f]  ;;  %v781_v7 = vmul.f32 %v1449_v23, %v762_v46  ;;  %v651_v11 = vmul.f32 %v1421_v59, %v632_v47  ;;  %v750_v60 = vadd.f32 %v736_v9, %v702_v36  ;;  %v705_v44 = vadd.f32 %v691_v57, %v658_v49 }
  0x73   : > { %v720_v40 = vld [vmem:[#allocation2 + $0x80] sm:$0x7f]  ;;  %v764_v45 = vld [vmem:[#allocation2 + $0x51] sm:$0x7f]  ;;  %v782_v15 = vmul.f32 %v1449_v23, %v763_v63  ;;  %v794_v27 = vadd.f32 %v780_v6, %v747_v31  ;;  %v740_v28 = vmul.f32 %v1375_v43, %v721_v26  ;;  %v751_v20 = vadd.f32 %v737_v17, %v703_v42 }
  0x74   : > { %v766_v13 = vld [vmem:[#allocation2 + $0x71] sm:$0x7f]  ;;  %v808_v50 = vld [vmem:[#allocation2 + $0x22] sm:$0x7f]  ;;  %v739_v18 = vmul.f32 %v1375_v43, %v720_v40  ;;  %v795_v33 = vadd.f32 %v781_v7, %v748_v8  ;;  %v783_v59 = vmul.f32 %v1449_v23, %v764_v45  ;;  %v752_v10 = vadd.f32 %v738_v22, %v704_v38 }
  0x75   : > { %v809_v16 = vld [vmem:[#allocation2 + $0x32] sm:$0x7f]  ;;  %v765_v19 = vld [vmem:[#allocation2 + $0x61] sm:$0x7f]  ;;  %v796_v54 = vadd.f32 %v782_v15, %v749_v1  ;;  %v785_v32 = vmul.f32 %v1449_v23, %v766_v13  ;;  %v827_v36 = vmul.f32 %v1557_v4, %v808_v50  ;;  %v618_v39 = vadd.f32 %v604_v24, %v1539_v3 }
  0x76   : > { %v810_v34 = vld [vmem:[#allocation2 + $0x42] sm:$0x7f]  ;;  %v811_v41 = vld [vmem:[#allocation2 + $0x52] sm:$0x7f]  ;;  %v828_v37 = vmul.f32 %v1557_v4, %v809_v16  ;;  %v784_v46 = vmul.f32 %v1449_v23, %v765_v19  ;;  %v797_v47 = vadd.f32 %v783_v59, %v750_v60  ;;  %v707_v31 = vadd.f32 %v1454_v25, %v1469_v52 }
  0x77   : > { %v767_v30 = vld [vmem:[#allocation2 + $0x81] sm:$0x7f]  ;;  %v768_v0 = vld [vmem:[#allocation2 + $0xb1] sm:$0x7f]  ;;  %v829_v57 = vmul.f32 %v1557_v4, %v810_v34  ;;  %v753_v8 = vadd.f32 %v739_v18, %v705_v44  ;;  %v1576_v42 = vadd.f32 %v827_v36, %v794_v27  ;;  %v830_v24 = vmul.f32 %v1557_v4, %v811_v41 }
  0x78   : > { %v812_v49 = vld [vmem:[#allocation2 + $0x62] sm:$0x7f]  ;;  %v813_v63 = vld [vmem:[#allocation2 + $0x72] sm:$0x7f]  ;;  %v1578_v40 = vadd.f32 %v828_v37, %v795_v33  ;;  %v786_v17 = vmul.f32 %v1449_v23, %v767_v30  ;;  %v798_v3 = vadd.f32 %v784_v46, %v751_v20  ;;  %v754_v26 = vadd.f32 %v740_v28, %v706_v12 }
  0x79   : > { %v769_v9 = vld [vmem:[#allocation2 + $0xc1] sm:$0x7f]  ;;  %v1582_v1 = vadd.f32 %v829_v57, %v796_v54  ;;  %v787_v38 = vmul.f32 %v1449_v23, %v768_v0  ;;  %v799_v22 = vadd.f32 %v785_v32, %v752_v10  ;;  %v831_v25 = vmul.f32 %v1557_v4, %v812_v49  ;;  %v815_v16 = vld [vmem:[#allocation2 + $0xb2] sm:$0x7f] }
  0x7a   : > { %v814_v45 = vld [vmem:[#allocation2 + $0x82] sm:$0x7f]  ;;  %v832_v6 = vmul.f32 %v1557_v4, %v813_v63  ;;  %v1587_v7 = vadd.f32 %v830_v24, %v797_v47  ;;  %v856_v60 = vsel %vm855_vm0, %v1576_v42, 0.0  ;;  %v857_v13 = vsel %vm855_vm0, %v1578_v40, 0.0  ;;  %v772_v59 = vld [vmem:[#allocation2 + $0xf1] sm:$0x7f] }
  0x7b   : > { %v679_v52 = vld [vmem:[#allocation2 + $0x102] sm:$0x7f]  ;;  %v664_v12 = vadd.f32 %v1513_v14, %v1533_v5  ;;  %v755_v15 = vadd.f32 %v1459_v35, %v707_v31  ;;  %v788_v50 = vmul.f32 %v1449_v23, %v769_v9  ;;  %v858_v44 = vadd.f32 %v857_v13, %v856_v60  ;;  %v817_v41 = vld [vmem:[#allocation2 + $0xd2] sm:$0x7f] }
  0x7c   : > { %v726_v18 = vld [vmem:[#allocation2 + $0x100] sm:$0x7f]  ;;  %v800_v19 = vadd.f32 %v786_v17, %v753_v8  ;;  %v833_v27 = vmul.f32 %v1557_v4, %v814_v45  ;;  %v1598_v33 = vadd.f32 %v831_v25, %v798_v3  ;;  %v859_v34 = vsel %vm855_vm0, %v1582_v1, 0.0  ;;  %v774_v57 = vld [vmem:[#allocation2 + $0x111] sm:$0x7f] }
  0x7d   : > { %v665_v28 = vadd.f32 %v651_v11, %v618_v39  ;;  %v698_v20 = vmul.f32 %v1427_v2, %v679_v52  ;;  %v756_v14 = vadd.f32 %v1472_v55, %v1497_v48  ;;  %v816_v35 = vld [vmem:[#allocation2 + $0xc2] sm:$0x7f]  ;;  %v860_v5 = vadd.f32 %v859_v34, %v858_v44 }
  0x7e   : > { %v801_v54 = vadd.f32 %v787_v38, %v754_v26  ;;  %v834_v10 = vmul.f32 %v1557_v4, %v815_v16  ;;  %v1606_v30 = vadd.f32 %v832_v6, %v799_v22  ;;  %v861_v32 = vsel %vm855_vm0, %v1587_v7, 0.0  ;;  %v818_v48 = vld [vmem:[#allocation2 + $0xe2] sm:$0x7f] }
  0x7f   : > { %v757_v11 = vadd.f32 %v1491_v21, %v1501_v58  ;;  %v711_v2 = vadd.f32 %v1536_v62, %v664_v12  ;;  %v745_v36 = vmul.f32 %v1375_v43, %v726_v18  ;;  %v862_v55 = vadd.f32 %v861_v32, %v860_v5  ;;  %v773_v37 = vld [vmem:[#allocation2 + $0x101] sm:$0x7f]  ;;  %v819_v43 = vld [vmem:[#allocation2 + $0xf2] sm:$0x7f] }
  0x80   : > { %v802_v39 = vadd.f32 %v788_v50, %v755_v15  ;;  %v835_v0 = vmul.f32 %v1557_v4, %v816_v35  ;;  %v1615_v46 = vadd.f32 %v833_v27, %v800_v19  ;;  %v863_v47 = vsel %vm855_vm0, %v1598_v33, 0.0  ;;  %v820_v45 = vld [vmem:[#allocation2 + $0x102] sm:$0x7f]  ;;  %v821_v12 = vld [vmem:[#allocation2 + $0x112] sm:$0x7f] }
  0x81   : > { %v758_v49 = vadd.f32 %v1518_v29, %v1524_v51  ;;  %v791_v21 = vmul.f32 %v1449_v23, %v772_v59  ;;  %v712_v58 = vadd.f32 %v698_v20, %v665_v28  ;;  %v864_v62 = vadd.f32 %v863_v47, %v862_v55 }
  0x82   : > { %v803_v31 = vadd.f32 %v1475_v56, %v756_v14  ;;  %v836_v8 = vmul.f32 %v1557_v4, %v817_v41  ;;  %v1624_v63 = vadd.f32 %v834_v10, %v801_v54  ;;  %v865_v9 = vsel %vm855_vm0, %v1606_v30, 0.0 }
  0x83   : > { %v837_v17 = vmul.f32 %v1557_v4, %v818_v48  ;;  %v792_v3 = vmul.f32 %v1449_v23, %v773_v37  ;;  %v866_v29 = vadd.f32 %v865_v9, %v864_v62  ;;  %v759_v51 = vadd.f32 %v745_v36, %v711_v2 }
  0x84   : > { %v804_v24 = vadd.f32 %v1504_v61, %v757_v11  ;;  %v849_v26 = vadd.f32 %v835_v0, %v802_v39  ;;  %v867_v38 = vsel %vm855_vm0, %v1615_v46, 0.0  ;;  %v793_v56 = vmul.f32 %v1449_v23, %v774_v57 }
  0x85   : > { %v838_v22 = vmul.f32 %v1557_v4, %v819_v43  ;;  %v868_v25 = vadd.f32 %v867_v38, %v866_v29  ;;  %v805_v52 = vadd.f32 %v791_v21, %v758_v49  ;;  %v760_v6 = vadd.f32 %v1378_v53, %v712_v58 }
  0x86   : > { %v850_v60 = vadd.f32 %v836_v8, %v803_v31  ;;  %v869_v13 = vsel %vm855_vm0, %v1624_v63, 0.0  ;;  %v806_v61 = vadd.f32 %v792_v3, %v759_v51  ;;  %v839_v50 = vmul.f32 %v1557_v4, %v820_v45 }
  0x87   : > { %v870_v15 = vadd.f32 %v869_v13, %v868_v25  ;;  %v851_v16 = vadd.f32 %v837_v17, %v804_v24  ;;  %v871_v44 = vsel %vm855_vm0, %v849_v26, 0.0  ;;  %v840_v18 = vmul.f32 %v1557_v4, %v821_v12 }
  0x88   : > { %v807_v19 = vadd.f32 %v793_v56, %v760_v6  ;;  %v852_v27 = vadd.f32 %v838_v22, %v805_v52  ;;  %v873_v34 = vsel %vm855_vm0, %v850_v60, 0.0  ;;  %v853_v28 = vadd.f32 %v839_v50, %v806_v61 }
  0x89   : > { %v872_v23 = vadd.f32 %v871_v44, %v870_v15  ;;  %v875_v20 = vsel %vm855_vm0, %v851_v16, 0.0 }
  0x8a   : > { %v854_v35 = vadd.f32 %v840_v18, %v807_v19  ;;  %v877_v5 = vsel %vm855_vm0, %v852_v27, 0.0  ;;  %v879_v54 = vsel %vm855_vm0, %v853_v28, 0.0 }
  0x8b   : > { %v874_v53 = vadd.f32 %v873_v34, %v872_v23 }
  0x8c   : > { %v881_v32 = vsel %vm855_vm0, %v854_v35, 0.0 }
  0x8d   : > { %v876_v14 = vadd.f32 %v875_v20, %v874_v53 }
  0x8f   : > { %v878_v59 = vadd.f32 %v877_v5, %v876_v14 }
  0x91   : > { %v880_v10 = vadd.f32 %v879_v54, %v878_v59 }
  0x93   : > { %v882_v41 = vadd.f32 %v881_v32, %v880_v10 }
  0x95   : > { %v883_v4 = vrot.slane %v882_v41, 4 }
  0x97   : > { %v884_v11 = vadd.f32 %v883_v4, %v882_v41 }
  0x99   : > { %v885_v2 = vrot.slane %v884_v11, 2 }
  0x9b   : > { %v886_v36 = vadd.f32 %v885_v2, %v884_v11 }
  0x9d   : > { %v887_v55 = vrot.slane %v886_v36, 1 }
  0x9f   : > { %v888_v48 = vadd.f32 %v887_v55, %v886_v36 }
  0xa1   : > { %v889_v37 = vmul.f32 0.010204081, %v888_v48 }
  0xa3   : > { %v1647_v39 = vsub.f32 %v1576_v42, %v889_v37  ;;  %v1650_v0 = vsub.f32 %v1578_v40, %v889_v37  ;;  %v1653_v47 = vsub.f32 %v1582_v1, %v889_v37  ;;  %v1656_v49 = vsub.f32 %v1587_v7, %v889_v37 }
  0xa4   : > { %v1663_v62 = vsub.f32 %v1598_v33, %v889_v37  ;;  %v1668_v40 = vsub.f32 %v1606_v30, %v889_v37  ;;  %v1675_v31 = vsub.f32 %v1615_v46, %v889_v37  ;;  %v1681_v30 = vsub.f32 %v1624_v63, %v889_v37 }
  0xa5   : > { %v904_v21 = vmul.f32 %v1647_v39, %v1647_v39  ;;  %v905_v58 = vmul.f32 %v1650_v0, %v1650_v0  ;;  %v906_v42 = vmul.f32 %v1653_v47, %v1653_v47  ;;  %v907_v1 = vmul.f32 %v1656_v49, %v1656_v49 }
  0xa6   : > { %v908_v33 = vmul.f32 %v1663_v62, %v1663_v62  ;;  %v909_v17 = vmul.f32 %v1668_v40, %v1668_v40  ;;  %v1686_v51 = vsub.f32 %v849_v26, %v889_v37  ;;  %v910_v46 = vmul.f32 %v1675_v31, %v1675_v31 }
  0xa7   : > { %v918_v7 = vsel %vm855_vm0, %v904_v21, 0.0  ;;  %v919_v57 = vsel %vm855_vm0, %v905_v58, 0.0  ;;  %v921_v8 = vsel %vm855_vm0, %v906_v42, 0.0  ;;  %v923_v3 = vsel %vm855_vm0, %v907_v1, 0.0  ;;  %v954_v58 = vld [vmem:[%s362_s26] sm:$0x1] }
  0xa8   : > { %v920_v43 = vadd.f32 %v919_v57, %v918_v7  ;;  %v925_v24 = vsel %vm855_vm0, %v908_v33, 0.0  ;;  %v1691_v56 = vsub.f32 %v850_v60, %v889_v37  ;;  %v911_v63 = vmul.f32 %v1681_v30, %v1681_v30 }
  0xa9   : > { %v927_v22 = vsel %vm855_vm0, %v909_v17, 0.0  ;;  %v1696_v25 = vsub.f32 %v851_v16, %v889_v37  ;;  %v912_v26 = vmul.f32 %v1686_v51, %v1686_v51  ;;  %v929_v52 = vsel %vm855_vm0, %v910_v46, 0.0 }
  0xaa   : > { %v922_v9 = vadd.f32 %v921_v8, %v920_v43  ;;  %v1701_v13 = vsub.f32 %v852_v27, %v889_v37  ;;  %v913_v60 = vmul.f32 %v1691_v56, %v1691_v56  ;;  %v931_v12 = vsel %vm855_vm0, %v911_v63, 0.0  ;;  %v1213_v43 = vld [vmem:[%s365_s29] ss:$0 sm:$0xff] }
  0xab   : > { %v1706_v61 = vsub.f32 %v853_v28, %v889_v37  ;;  %v914_v50 = vmul.f32 %v1696_v25, %v1696_v25  ;;  %v933_v16 = vsel %vm855_vm0, %v912_v26, 0.0  ;;  %v1711_v23 = vsub.f32 %v854_v35, %v889_v37 }
  0xac   : > { %v924_v29 = vadd.f32 %v923_v3, %v922_v9  ;;  %v915_v18 = vmul.f32 %v1701_v13, %v1701_v13  ;;  %v935_v19 = vsel %vm855_vm0, %v913_v60, 0.0  ;;  %v956_v37 = vlaneseq }
  0xad   : > { %v916_v34 = vmul.f32 %v1706_v61, %v1706_v61  ;;  %v937_v53 = vsel %vm855_vm0, %v914_v50, 0.0  ;;  %v917_v20 = vmul.f32 %v1711_v23, %v1711_v23 }
  0xae   : > { %v926_v38 = vadd.f32 %v925_v24, %v924_v29  ;;  %v939_v14 = vsel %vm855_vm0, %v915_v18, 0.0  ;;  %v957_v21 = vshrl.u32 %v956_v37, 7 }
  0xaf   : > { %v941_v5 = vsel %vm855_vm0, %v916_v34, 0.0  ;;  %v943_v54 = vsel %vm855_vm0, %v917_v20, 0.0 }
  0xb0   : > { %v928_v45 = vadd.f32 %v927_v22, %v926_v38  ;;  %v958_v42 = vsub.s32 0, %v957_v21 }
  0xb2   : > { %v930_v6 = vadd.f32 %v929_v52, %v928_v45 }
  0xb4   : > { %v932_v15 = vadd.f32 %v931_v12, %v930_v6 }
  0xb6   : > { %v934_v44 = vadd.f32 %v933_v16, %v932_v15 }
  0xb8   : > { %v936_v27 = vadd.f32 %v935_v19, %v934_v44 }
  0xba   : > { %v938_v28 = vadd.f32 %v937_v53, %v936_v27 }
  0xbc   : > { %v940_v35 = vadd.f32 %v939_v14, %v938_v28 }
  0xbe   : > { %v942_v59 = vadd.f32 %v941_v5, %v940_v35 }
  0xc0   : > { %v944_v10 = vadd.f32 %v943_v54, %v942_v59 }
  0xc2   : > { %v945_v32 = vrot.slane %v944_v10, 4 }
  0xc4   : > { %v946_v41 = vadd.f32 %v945_v32, %v944_v10 }
  0xc6   : > { %v947_v4 = vrot.slane %v946_v41, 2 }
  0xc8   : > { %v948_v11 = vadd.f32 %v947_v4, %v946_v41 }
  0xca   : > { %v949_v2 = vrot.slane %v948_v11, 1 }
  0xcc   : > { %v950_v36 = vadd.f32 %v949_v2, %v948_v11 }
  0xce   : > { %v951_v55 = vmul.f32 0.010204081, %v950_v36 }
  0xd0   : > { %v952_v48 = vadd.f32 0.001, %v951_v55 }
  0xd2   : > { %1244 = vrsqrt.f32 %v952_v48 }
  0xdf   : > { %v1245_v1 = vpop.eup %1244 }
  0xe0   : > { %v955_v7 = vmul.f32 %v1245_v1, %v954_v58 }
  0xe2   : > { %v959_v57 = vrot.slane %v955_v7, %v958_v42 }
  0xe4   : > { %v960_v33 = vmul.f32 %v959_v57, %v1647_v39  ;;  %v961_v8 = vmul.f32 %v959_v57, %v1650_v0  ;;  %v962_v9 = vmul.f32 %v959_v57, %v1653_v47  ;;  %v963_v17 = vmul.f32 %v959_v57, %v1656_v49 }
  0xe5   : > { %v964_v3 = vmul.f32 %v959_v57, %v1663_v62  ;;  %v965_v29 = vmul.f32 %v959_v57, %v1668_v40  ;;  %v966_v46 = vmul.f32 %v959_v57, %v1675_v31  ;;  %v967_v24 = vmul.f32 %v959_v57, %v1681_v30 }
  0xe6   : > { %v981_v38 = vadd.f32 %v1213_v43, %v960_v33  ;;  %v982_v63 = vadd.f32 %v1213_v43, %v961_v8  ;;  %v983_v22 = vadd.f32 %v1213_v43, %v962_v9  ;;  %v984_v45 = vadd.f32 %v1213_v43, %v963_v17 }
  0xe7   : > { %v985_v39 = vadd.f32 %v1213_v43, %v964_v3  ;;  %v986_v26 = vadd.f32 %v1213_v43, %v965_v29  ;;  %v987_v52 = vadd.f32 %v1213_v43, %v966_v46  ;;  %v988_v0 = vadd.f32 %v1213_v43, %v967_v24 }
  0xe8   : > { %995 = vst [vmem:[%s1741_s30] sm:$0x7f] %v981_v38  ;;  %996 = vst [vmem:[%s1741_s30 + $0x8] sm:$0x7f] %v982_v63  ;;  %v968_v47 = vmul.f32 %v959_v57, %v1686_v51  ;;  %v969_v49 = vmul.f32 %v959_v57, %v1691_v56  ;;  %v970_v62 = vmul.f32 %v959_v57, %v1696_v25 }
  0xe9   : > { %997 = vst [vmem:[%s1741_s30 + $0x10] sm:$0x7f] %v983_v22  ;;  %998 = vst [vmem:[%s1741_s30 + $0x18] sm:$0x7f] %v984_v45  ;;  %v971_v40 = vmul.f32 %v959_v57, %v1701_v13  ;;  %v972_v31 = vmul.f32 %v959_v57, %v1706_v61  ;;  %v973_v30 = vmul.f32 %v959_v57, %v1711_v23 }
  0xea   : > { %999 = vst [vmem:[%s1741_s30 + $0x20] sm:$0x7f] %v985_v39  ;;  %1000 = vst [vmem:[%s1741_s30 + $0x28] sm:$0x7f] %v986_v26  ;;  %v989_v51 = vadd.f32 %v1213_v43, %v968_v47  ;;  %v990_v6 = vadd.f32 %v1213_v43, %v969_v49  ;;  %v991_v56 = vadd.f32 %v1213_v43, %v970_v62  ;;  %1015 = sbr.rel (!%p1331_p5) target bundleno = 247 (0xf7), region = 116 }
  0xeb   : > { %1001 = vst [vmem:[%s1741_s30 + $0x30] sm:$0x7f] %v987_v52  ;;  %1002 = vst [vmem:[%s1741_s30 + $0x38] sm:$0x7f] %v988_v0  ;;  %v992_v60 = vadd.f32 %v1213_v43, %v971_v40  ;;  %v993_v12 = vadd.f32 %v1213_v43, %v972_v31  ;;  %v994_v25 = vadd.f32 %v1213_v43, %v973_v30 }
  0xec   : > { %1003 = vst [vmem:[%s1741_s30 + $0x40] sm:$0x7f] %v989_v51  ;;  %1004 = vst [vmem:[%s1741_s30 + $0x48] sm:$0x7f] %v990_v6 }
  0xed   : > { %1005 = vst [vmem:[%s1741_s30 + $0x50] sm:$0x7f] %v991_v56  ;;  %1006 = vst [vmem:[%s1741_s30 + $0x58] sm:$0x7f] %v992_v60 }
  0xee   : > { %1007 = vst [vmem:[%s1741_s30 + $0x60] sm:$0x7f] %v993_v12  ;;  %1008 = vst [vmem:[%s1741_s30 + $0x68] sm:$0x7f] %v994_v25 }
  0xef   : > { %v1072_v13 = vld [vmem:[%s1741_s30] sm:$0xff]  ;;  %v1074_v15 = vld [vmem:[%s1741_s30 + $0x8] sm:$0xff] }
  0xf0   : > { %v1076_v61 = vld [vmem:[%s1741_s30 + $0x10] sm:$0xff]  ;;  %v1078_v50 = vld [vmem:[%s1741_s30 + $0x18] sm:$0xff]  ;;  %1073 = vst [vmem:[%s1017_s8] sm:$0xff] %v1072_v13  ;;  %1075 = vst [vmem:[%s1017_s8 + $0x18] sm:$0xff] %v1074_v15 }
  0xf1   : > { %v1080_v16 = vld [vmem:[%s1741_s30 + $0x20] sm:$0xff]  ;;  %v1082_v44 = vld [vmem:[%s1741_s30 + $0x28] sm:$0xff]  ;;  %1077 = vst [vmem:[%s1017_s8 + $0x30] sm:$0xff] %v1076_v61  ;;  %1079 = vst [vmem:[%s1017_s8 + $0x48] sm:$0xff] %v1078_v50 }
  0xf2   : > { %1081 = vst [vmem:[%s1017_s8 + $0x60] sm:$0xff] %v1080_v16  ;;  %1083 = vst [vmem:[%s1017_s8 + $0x78] sm:$0xff] %v1082_v44  ;;  %v1084_v23 = vld [vmem:[%s1741_s30 + $0x30] sm:$0xff]  ;;  %v1086_v18 = vld [vmem:[%s1741_s30 + $0x38] sm:$0xff] }
  0xf3   : > { %v1088_v19 = vld [vmem:[%s1741_s30 + $0x40] sm:$0xff]  ;;  %1085 = vst [vmem:[%s1017_s8 + $0x90] sm:$0xff] %v1084_v23  ;;  %1087 = vst [vmem:[%s1017_s8 + $0xa8] sm:$0xff] %v1086_v18  ;;  %v1090_v27 = vld [vmem:[%s1741_s30 + $0x48] sm:$0xff] }
  0xf4   : > { %1089 = vst [vmem:[%s1017_s8 + $0xc0] sm:$0xff] %v1088_v19  ;;  %v1092_v34 = vld [vmem:[%s1741_s30 + $0x50] sm:$0xff]  ;;  %v1094_v53 = vld [vmem:[%s1741_s30 + $0x58] sm:$0xff]  ;;  %1091 = vst [vmem:[%s1017_s8 + $0xd8] sm:$0xff] %v1090_v27 }
  0xf5   : > { %1093 = vst [vmem:[%s1017_s8 + $0xf0] sm:$0xff] %v1092_v34  ;;  %1095 = vst [vmem:[%s1017_s8 + $0x108] sm:$0xff] %v1094_v53  ;;  %v1096_v28 = vld [vmem:[%s1741_s30 + $0x60] sm:$0xff]  ;;  %v1098_v20 = vld [vmem:[%s1741_s30 + $0x68] sm:$0xff] }
  0xf6   : > { %1097 = vst [vmem:[%s1017_s8 + $0x120] sm:$0xff] %v1096_v28  ;;  %1099 = vst [vmem:[%s1017_s8 + $0x138] sm:$0xff] %v1098_v20 }
  0xf7 PF: > { %p11_p11 = scmp.ge.s32.totalorder %s1315_s19, 5   ;;  %s1800_s15 = smov %s1264_s16 }
  0xf8   : > { %s1801_s16 = smov %s1325_s22  ;;  %s1802_s17 = smov %s1315_s19 }
  0xf9   :  { %13 = sbr.rel (!%p11_p11) target bundleno = 2 (0x2), region = 201 }

</bundles_post_ra>
